<compile_context>
chip_gen: v7x
topology: tpu7x:2x2x1
jax: 0.10.0
libtpu: 0.0.40
codegen_flags: <defaults>
</compile_context>

<pallas_src>
import jax
import jax.numpy as jnp
from jax.experimental import pallas as pl
from jax.experimental.pallas import tpu as pltpu

_HID_CHUNK = 128   # hidden-dim chunk width inside the kernel (one MXU lane tile)
_LANE = 128
_SUBLANE = 8


def _round_up(x, m):
    return (x + m - 1) // m * m


def mlp_kernel(x_ref, w1_ref, b1_ref, w2_ref, b2_ref, o_ref):
    """One batch tile of fc2(relu(fc1(x)))."""
    # x arrives in f32 (no padded HBM copy in the wrapper); cast to bf16 once
    # here for the MXU passes (f32 accumulation on the MXU).
    x = x_ref[...].astype(jnp.bfloat16)            # (tb, in)
    tb = x.shape[0]
    out_p = o_ref.shape[1]
    n_chunks = w1_ref.shape[1] // _HID_CHUNK       # hid_p is a 128-multiple

    # Chunk the hidden dim so the live f32 intermediate is only (tb, 128)
    # instead of the full (tb, hid_p) slab.  Static ref slices are free; the
    # small loop is fully unrolled at trace time.
    acc = jnp.zeros((tb, out_p), jnp.float32)
    for c in range(n_chunks):
        lo, hi = c * _HID_CHUNK, (c + 1) * _HID_CHUNK
        h = jnp.dot(x, w1_ref[:, lo:hi], preferred_element_type=jnp.float32)
        h = jnp.maximum(h + b1_ref[:, lo:hi], 0.0)        # bias + ReLU (f32, VPU)
        acc = acc + jnp.dot(h.astype(jnp.bfloat16), w2_ref[lo:hi, :],
                            preferred_element_type=jnp.float32)
    o_ref[...] = (acc + b2_ref[...]).astype(o_ref.dtype)


def prepare_params(w1, b1, w2, b2):
    """Pad / cast parameters ONCE (hoisted out of the per-call forward path).

    w1: (in, hidden), b1: (hidden,) or (1, hidden), w2: (hidden, out),
    b2: (out,) or (1, out).  Weights are (in, out), i.e. transposed vs. PyTorch.
    Zero padding is numerically exact: padded hidden lanes give relu(0)=0 and
    padded output lanes are sliced off.
    """
    in_size, hidden = w1.shape
    out_size = w2.shape[1]
    hid_p = _round_up(hidden, _HID_CHUNK)
    out_p = _round_up(out_size, _LANE)
    b1 = jnp.reshape(b1, (1, hidden))
    b2 = jnp.reshape(b2, (1, out_size))

    w1p = jnp.zeros((in_size, hid_p), jnp.bfloat16).at[:, :hidden].set(
        w1.astype(jnp.bfloat16))
    b1p = jnp.zeros((1, hid_p), jnp.float32).at[:, :hidden].set(
        b1.astype(jnp.float32))
    w2p = jnp.zeros((hid_p, out_p), jnp.bfloat16).at[:hidden, :out_size].set(
        w2.astype(jnp.bfloat16))
    b2p = jnp.zeros((1, out_p), jnp.float32).at[:, :out_size].set(
        b2.astype(jnp.float32))
    return dict(w1p=w1p, b1p=b1p, w2p=w2p, b2p=b2p,
                in_size=in_size, hidden=hidden, out_size=out_size,
                hid_p=hid_p, out_p=out_p)


def make_mlp_forward(params, *, batch_tile=512):
    """Return a jitted forward(x) closed over the pre-padded parameters.

    The whole forward (batch pad + pallas_call + un-pad slice) lives inside a
    single jit, so the only per-call HBM traffic is x in and the output out.
    """
    w1p, b1p, w2p, b2p = params["w1p"], params["b1p"], params["w2p"], params["b2p"]
    in_size, hidden = params["in_size"], params["hidden"]
    out_size, hid_p, out_p = params["out_size"], params["hid_p"], params["out_p"]

    @jax.jit
    def forward(x):
        B = x.shape[0]
        assert x.shape[1] == in_size

        # Remainder-friendly batch tiling:
        #  * <= batch_tile rows per grid step (amortizes ~0.35 us/step),
        #  * >= 2 steps when there are enough rows so v7x's second TensorCore
        #    participates via the "parallel" batch axis,
        #  * per-step rows rounded to a sublane multiple (8) only, never a
        #    power-of-two round-up (avoids ~2x batch padding).
        n_steps = pl.cdiv(B, batch_tile)
        if B >= 256:
            n_steps = max(n_steps, 2)
        tb = _round_up(pl.cdiv(B, n_steps), _SUBLANE)
        b_p = n_steps * tb
        xp = x if b_p == B else jnp.pad(x, ((0, b_p - B), (0, 0)))

        flops = 2 * B * (in_size * hidden + hidden * out_size)
        bytes_accessed = (b_p * in_size * 4 + w1p.size * 2 + w2p.size * 2
                          + b1p.size * 4 + b2p.size * 4 + b_p * out_p * 4)

        out_padded = pl.pallas_call(
            mlp_kernel,
            out_shape=jax.ShapeDtypeStruct((b_p, out_p), jnp.float32),
            grid_spec=pltpu.PrefetchScalarGridSpec(
                num_scalar_prefetch=0,
                grid=(n_steps,),
                in_specs=[
                    # Activations: blocked on batch, f32, full-extent last dim
                    # (no padded HBM copy of x; bf16 cast happens in-kernel).
                    pl.BlockSpec((tb, in_size), lambda i: (i, 0)),
                    # Weights / biases: constant block index -> VMEM-resident
                    # across all batch tiles.  (If these layers ever grow to
                    # multi-MiB on v7x, additionally single-buffer them; at
                    # hidden=500 they are <1 MiB so default buffering is fine.)
                    pl.BlockSpec((in_size, hid_p), lambda i: (0, 0)),
                    pl.BlockSpec((1, hid_p), lambda i: (0, 0)),
                    pl.BlockSpec((hid_p, out_p), lambda i: (0, 0)),
                    pl.BlockSpec((1, out_p), lambda i: (0, 0)),
                ],
                out_specs=pl.BlockSpec((tb, out_p), lambda i: (i, 0)),
            ),
            compiler_params=pltpu.CompilerParams(
                # Independent batch tiles -> megacore-shardable on v7x.
                dimension_semantics=("parallel",),
                # Budgeted well under v7x's 64 MiB physical VMEM.
                vmem_limit_bytes=32 * 1024 * 1024,
            ),
            cost_estimate=pl.CostEstimate(
                flops=flops, transcendentals=0, bytes_accessed=bytes_accessed),
        )(xp, w1p, b1p, w2p, b2p)

        return out_padded[:B, :out_size]

    return forward


def mlp_forward_xla(x, w1, b1, w2, b2):
    """Plain fused-XLA path.  At tiny batches (B in the single digits) the
    custom-call + grid overhead exceeds the Pallas kernel's useful work, so
    production code at such shapes should inline this inside the surrounding
    jit; the Pallas path pays off once B is in the hundreds-to-thousands."""
    h = jnp.maximum(x @ w1 + jnp.reshape(b1, (1, -1)), 0.0)
    return h @ w2 + jnp.reshape(b2, (1, -1))


def init_params(key, in_size, hidden_size, out_size):
    """Deterministic init mimicking nn.Linear (uniform +/- 1/sqrt(fan_in)).
    Weights stored as (in, out) — transpose of PyTorch's (out, in)."""
    k1, k2, k3, k4 = jax.random.split(key, 4)
    lim1 = 1.0 / jnp.sqrt(in_size)
    lim2 = 1.0 / jnp.sqrt(hidden_size)
    w1 = jax.random.uniform(k1, (in_size, hidden_size), jnp.float32, -lim1, lim1)
    b1 = jax.random.uniform(k2, (1, hidden_size), jnp.float32, -lim1, lim1)
    w2 = jax.random.uniform(k3, (hidden_size, out_size), jnp.float32, -lim2, lim2)
    b2 = jax.random.uniform(k4, (1, out_size), jnp.float32, -lim2, lim2)
    return w1, b1, w2, b2


if __name__ == "__main__":
    # Shapes consistent with the module: Linear(in, 500) -> ReLU -> Linear(500, out)
    batch, in_size, hidden_size, out_size = 8, 64, 500, 10

    key = jax.random.PRNGKey(0)
    kx, kp, kx2 = jax.random.split(key, 3)
    w1, b1, w2, b2 = init_params(kp, in_size, hidden_size, out_size)

    # Parameter prep is hoisted out of the forward path (done once).
    params = prepare_params(w1, b1, w2, b2)
    forward = make_mlp_forward(params)

    def reference(x):
        # Reference applying the same bf16 quantization of MXU operands
        # (f32 accumulate), mirroring the kernel's math up to accumulation order.
        xq = x.astype(jnp.bfloat16).astype(jnp.float32)
        w1q = w1.astype(jnp.bfloat16).astype(jnp.float32)
        w2q = w2.astype(jnp.bfloat16).astype(jnp.float32)
        h = jnp.maximum(xq @ w1q + b1, 0.0)
        return h.astype(jnp.bfloat16).astype(jnp.float32) @ w2q + b2

    # Small demo batch (single grid step).
    x = jax.random.normal(kx, (batch, in_size), jnp.float32)
    out = forward(x)
    jax.block_until_ready(out)
    assert out.shape == (batch, out_size)
    assert jnp.allclose(out, reference(x), atol=1e-2, rtol=1e-2)

    # Larger batch exercising the multi-step "parallel" grid and batch padding.
    x2 = jax.random.normal(kx2, (300, in_size), jnp.float32)
    out2 = forward(x2)
    jax.block_until_ready(out2)
    assert out2.shape == (300, out_size)
    assert jnp.allclose(out2, reference(x2), atol=1e-2, rtol=1e-2)

    print("KERNEL_OK")
</pallas_src>

<mosaic_0001>
module attributes {stable_mosaic.version = 11 : i64} {
  func.func @mlp_kernel(%arg0: i32, %arg1: memref<8x64xf32, #tpu.memory_space<vmem>>, %arg2: memref<64x512xbf16, #tpu.memory_space<vmem>>, %arg3: memref<1x512xf32, #tpu.memory_space<vmem>>, %arg4: memref<512x128xbf16, #tpu.memory_space<vmem>>, %arg5: memref<1x128xf32, #tpu.memory_space<vmem>>, %arg6: memref<8x128xf32, #tpu.memory_space<vmem>>) attributes {dimension_semantics = [#tpu.dimension_semantics<parallel>], iteration_bounds = array<i64: 1>, scalar_prefetch = 0 : i64, scratch_operands = 0 : i64, tpu.core_type = #tpu.core_type<tc>, window_params = [{transform_indices = @transform_0, window_bounds = array<i64: 8, 64>}, {pipeline_mode = #tpu.pipeline_mode<synchronous>, transform_indices = @transform_1, window_bounds = array<i64: 64, 512>}, {pipeline_mode = #tpu.pipeline_mode<synchronous>, transform_indices = @transform_2, window_bounds = array<i64: 1, 512>}, {pipeline_mode = #tpu.pipeline_mode<synchronous>, transform_indices = @transform_3, window_bounds = array<i64: 512, 128>}, {pipeline_mode = #tpu.pipeline_mode<synchronous>, transform_indices = @transform_4, window_bounds = array<i64: 1, 128>}, {transform_indices = @transform_5, window_bounds = array<i64: 8, 128>}]} {
    %c0 = arith.constant 0 : index
    %c0_0 = arith.constant 0 : index
    %0 = vector.load %arg1[%c0, %c0_0] : memref<8x64xf32, #tpu.memory_space<vmem>>, vector<8x64xf32>
    %1 = arith.truncf %0 : vector<8x64xf32> to vector<8x64xbf16>
    %cst = arith.constant 0.000000e+00 : f32
    %2 = vector.broadcast %cst : f32 to vector<8x128xf32>
    %c0_1 = arith.constant 0 : index
    %c0_2 = arith.constant 0 : index
    %3 = vector.load %arg2[%c0_1, %c0_2] : memref<64x512xbf16, #tpu.memory_space<vmem>>, vector<64x128xbf16>
    %cst_3 = arith.constant dense<0.000000e+00> : vector<8x128xf32>
    %4 = tpu.matmul %1, %3, %cst_3 {dimension_numbers = #tpu.dot_dimension_numbers<[1], [0], [0], [1], [0, 0, 1, 1], [], []>} : vector<8x64xbf16>, vector<64x128xbf16>, vector<8x128xf32> -> vector<8x128xf32>
    %c0_4 = arith.constant 0 : index
    %c0_5 = arith.constant 0 : index
    %5 = vector.load %arg3[%c0_4, %c0_5] : memref<1x512xf32, #tpu.memory_space<vmem>>, vector<1x128xf32>
    %6 = vector.broadcast %5 : vector<1x128xf32> to vector<8x128xf32>
    %7 = arith.addf %4, %6 : vector<8x128xf32>
    %cst_6 = arith.constant 0.000000e+00 : f32
    %8 = vector.broadcast %cst_6 : f32 to vector<8x128xf32>
    %9 = arith.maximumf %7, %8 : vector<8x128xf32>
    %10 = arith.truncf %9 : vector<8x128xf32> to vector<8x128xbf16>
    %c0_7 = arith.constant 0 : index
    %c0_8 = arith.constant 0 : index
    %11 = vector.load %arg4[%c0_7, %c0_8] : memref<512x128xbf16, #tpu.memory_space<vmem>>, vector<128x128xbf16>
    %cst_9 = arith.constant dense<0.000000e+00> : vector<8x128xf32>
    %12 = tpu.matmul %10, %11, %cst_9 {dimension_numbers = #tpu.dot_dimension_numbers<[1], [0], [0], [1], [0, 0, 1, 1], [], []>} : vector<8x128xbf16>, vector<128x128xbf16>, vector<8x128xf32> -> vector<8x128xf32>
    %13 = arith.addf %2, %12 : vector<8x128xf32>
    %c0_10 = arith.constant 0 : index
    %c128 = arith.constant 128 : index
    %14 = vector.load %arg2[%c0_10, %c128] : memref<64x512xbf16, #tpu.memory_space<vmem>>, vector<64x128xbf16>
    %cst_11 = arith.constant dense<0.000000e+00> : vector<8x128xf32>
    %15 = tpu.matmul %1, %14, %cst_11 {dimension_numbers = #tpu.dot_dimension_numbers<[1], [0], [0], [1], [0, 0, 1, 1], [], []>} : vector<8x64xbf16>, vector<64x128xbf16>, vector<8x128xf32> -> vector<8x128xf32>
    %c0_12 = arith.constant 0 : index
    %c128_13 = arith.constant 128 : index
    %16 = vector.load %arg3[%c0_12, %c128_13] : memref<1x512xf32, #tpu.memory_space<vmem>>, vector<1x128xf32>
    %17 = vector.broadcast %16 : vector<1x128xf32> to vector<8x128xf32>
    %18 = arith.addf %15, %17 : vector<8x128xf32>
    %cst_14 = arith.constant 0.000000e+00 : f32
    %19 = vector.broadcast %cst_14 : f32 to vector<8x128xf32>
    %20 = arith.maximumf %18, %19 : vector<8x128xf32>
    %21 = arith.truncf %20 : vector<8x128xf32> to vector<8x128xbf16>
    %c128_15 = arith.constant 128 : index
    %c0_16 = arith.constant 0 : index
    %22 = vector.load %arg4[%c128_15, %c0_16] : memref<512x128xbf16, #tpu.memory_space<vmem>>, vector<128x128xbf16>
    %cst_17 = arith.constant dense<0.000000e+00> : vector<8x128xf32>
    %23 = tpu.matmul %21, %22, %cst_17 {dimension_numbers = #tpu.dot_dimension_numbers<[1], [0], [0], [1], [0, 0, 1, 1], [], []>} : vector<8x128xbf16>, vector<128x128xbf16>, vector<8x128xf32> -> vector<8x128xf32>
    %24 = arith.addf %13, %23 : vector<8x128xf32>
    %c0_18 = arith.constant 0 : index
    %c256 = arith.constant 256 : index
    %25 = vector.load %arg2[%c0_18, %c256] : memref<64x512xbf16, #tpu.memory_space<vmem>>, vector<64x128xbf16>
    %cst_19 = arith.constant dense<0.000000e+00> : vector<8x128xf32>
    %26 = tpu.matmul %1, %25, %cst_19 {dimension_numbers = #tpu.dot_dimension_numbers<[1], [0], [0], [1], [0, 0, 1, 1], [], []>} : vector<8x64xbf16>, vector<64x128xbf16>, vector<8x128xf32> -> vector<8x128xf32>
    %c0_20 = arith.constant 0 : index
    %c256_21 = arith.constant 256 : index
    %27 = vector.load %arg3[%c0_20, %c256_21] : memref<1x512xf32, #tpu.memory_space<vmem>>, vector<1x128xf32>
    %28 = vector.broadcast %27 : vector<1x128xf32> to vector<8x128xf32>
    %29 = arith.addf %26, %28 : vector<8x128xf32>
    %cst_22 = arith.constant 0.000000e+00 : f32
    %30 = vector.broadcast %cst_22 : f32 to vector<8x128xf32>
    %31 = arith.maximumf %29, %30 : vector<8x128xf32>
    %32 = arith.truncf %31 : vector<8x128xf32> to vector<8x128xbf16>
    %c256_23 = arith.constant 256 : index
    %c0_24 = arith.constant 0 : index
    %33 = vector.load %arg4[%c256_23, %c0_24] : memref<512x128xbf16, #tpu.memory_space<vmem>>, vector<128x128xbf16>
    %cst_25 = arith.constant dense<0.000000e+00> : vector<8x128xf32>
    %34 = tpu.matmul %32, %33, %cst_25 {dimension_numbers = #tpu.dot_dimension_numbers<[1], [0], [0], [1], [0, 0, 1, 1], [], []>} : vector<8x128xbf16>, vector<128x128xbf16>, vector<8x128xf32> -> vector<8x128xf32>
    %35 = arith.addf %24, %34 : vector<8x128xf32>
    %c0_26 = arith.constant 0 : index
    %c384 = arith.constant 384 : index
    %36 = vector.load %arg2[%c0_26, %c384] : memref<64x512xbf16, #tpu.memory_space<vmem>>, vector<64x128xbf16>
    %cst_27 = arith.constant dense<0.000000e+00> : vector<8x128xf32>
    %37 = tpu.matmul %1, %36, %cst_27 {dimension_numbers = #tpu.dot_dimension_numbers<[1], [0], [0], [1], [0, 0, 1, 1], [], []>} : vector<8x64xbf16>, vector<64x128xbf16>, vector<8x128xf32> -> vector<8x128xf32>
    %c0_28 = arith.constant 0 : index
    %c384_29 = arith.constant 384 : index
    %38 = vector.load %arg3[%c0_28, %c384_29] : memref<1x512xf32, #tpu.memory_space<vmem>>, vector<1x128xf32>
    %39 = vector.broadcast %38 : vector<1x128xf32> to vector<8x128xf32>
    %40 = arith.addf %37, %39 : vector<8x128xf32>
    %cst_30 = arith.constant 0.000000e+00 : f32
    %41 = vector.broadcast %cst_30 : f32 to vector<8x128xf32>
    %42 = arith.maximumf %40, %41 : vector<8x128xf32>
    %43 = arith.truncf %42 : vector<8x128xf32> to vector<8x128xbf16>
    %c384_31 = arith.constant 384 : index
    %c0_32 = arith.constant 0 : index
    %44 = vector.load %arg4[%c384_31, %c0_32] : memref<512x128xbf16, #tpu.memory_space<vmem>>, vector<128x128xbf16>
    %cst_33 = arith.constant dense<0.000000e+00> : vector<8x128xf32>
    %45 = tpu.matmul %43, %44, %cst_33 {dimension_numbers = #tpu.dot_dimension_numbers<[1], [0], [0], [1], [0, 0, 1, 1], [], []>} : vector<8x128xbf16>, vector<128x128xbf16>, vector<8x128xf32> -> vector<8x128xf32>
    %46 = arith.addf %35, %45 : vector<8x128xf32>
    %c0_34 = arith.constant 0 : index
    %c0_35 = arith.constant 0 : index
    %47 = vector.load %arg5[%c0_34, %c0_35] : memref<1x128xf32, #tpu.memory_space<vmem>>, vector<1x128xf32>
    %48 = vector.broadcast %47 : vector<1x128xf32> to vector<8x128xf32>
    %49 = arith.addf %46, %48 : vector<8x128xf32>
    %c0_36 = arith.constant 0 : index
    %c0_37 = arith.constant 0 : index
    %50 = vector.load %arg6[%c0_36, %c0_37] : memref<8x128xf32, #tpu.memory_space<vmem>>, vector<8x128xf32>
    tpu.vector_store %arg6[%c0_36, %c0_37], %49 {strides = array<i32>} : memref<8x128xf32, #tpu.memory_space<vmem>>, vector<8x128xf32>,
    return
  }
  func.func @transform_0(%arg0: i32) -> (i32, i32) {
    %c0_i32 = arith.constant 0 : i32
    %c0_i32_0 = arith.constant 0 : i32
    return %arg0, %c0_i32 : i32, i32
  }
  func.func @transform_1(%arg0: i32) -> (i32, i32) {
    %c0_i32 = arith.constant 0 : i32
    %c0_i32_0 = arith.constant 0 : i32
    %c0_i32_1 = arith.constant 0 : i32
    return %c0_i32, %c0_i32_0 : i32, i32
  }
  func.func @transform_2(%arg0: i32) -> (i32, i32) {
    %c0_i32 = arith.constant 0 : i32
    %c0_i32_0 = arith.constant 0 : i32
    %c0_i32_1 = arith.constant 0 : i32
    return %c0_i32, %c0_i32_0 : i32, i32
  }
  func.func @transform_3(%arg0: i32) -> (i32, i32) {
    %c0_i32 = arith.constant 0 : i32
    %c0_i32_0 = arith.constant 0 : i32
    %c0_i32_1 = arith.constant 0 : i32
    return %c0_i32, %c0_i32_0 : i32, i32
  }
  func.func @transform_4(%arg0: i32) -> (i32, i32) {
    %c0_i32 = arith.constant 0 : i32
    %c0_i32_0 = arith.constant 0 : i32
    %c0_i32_1 = arith.constant 0 : i32
    return %c0_i32, %c0_i32_0 : i32, i32
  }
  func.func @transform_5(%arg0: i32) -> (i32, i32) {
    %c0_i32 = arith.constant 0 : i32
    %c0_i32_0 = arith.constant 0 : i32
    return %arg0, %c0_i32 : i32, i32
  }
}

</mosaic_0001>

<bundles_post_ra>
// kernel: forward.1
= control target key start
LH: loop header
LB: loop body
LE: loop exit
PB: predicated region body
PF: predicated region fallthrough
CT: control target
= control target key end

     0   :  { %v1109_v0 = vmov 0.0   ;;  %vm1110_vm0 = vmmov 0   ;;  %vm63_vm1 = vcmask 523264   ;;  %s1390_s0 = inlined_call_operand.vmem [shape: f32[8,64], index: 0, kind: input, shape index: {}]   ;;  %s1391_s1 = inlined_call_operand.vmem [shape: bf16[64,512], index: 1, kind: input, shape index: {}]   ;;  %s1392_s2 = inlined_call_operand.vmem [shape: f32[1,512], index: 2, kind: input, shape index: {}]   ;;  %s1393_s3 = inlined_call_operand.vmem [shape: bf16[512,128], index: 3, kind: input, shape index: {}]   ;;  %s1394_s4 = inlined_call_operand.vmem [shape: f32[1,128], index: 4, kind: input, shape index: {}]   ;;  %s1395_s5 = inlined_call_operand.hbm [shape: f32[8,128], index: 5, kind: output, shape index: {}]  }
   0x1   :  { %906 = vmatprep.subr.bf16.mxu1 %v1109_v0  ;;  %v1037_v1 = vld [vmem:[%s1391_s1] ss:$16 sps:$4 sm:$0xff]   ;;  %914 = vmatprep.mubr.msk.bf16.mxu1 %vm1110_vm0, %v1109_v0  ;;  %v1041_v8 = vld [vmem:[%s1391_s1 + $0x4] ss:$16 sps:$4 sm:$0xff]   ;;  %v1051_v9 = vld [vmem:[%s1393_s3 + $0x48] sm:$0xff]  }
   0x2   :  { %930 = vmatprep.subr.bf16.mxu0 %v1109_v0  ;;  %946 = vmatprep.mubr.msk.bf16.mxu0 %vm1110_vm0, %v1109_v0  ;;  %v1038_v2 = vld [vmem:[%s1391_s1 + $0x20] ss:$16 sps:$4 sm:$0xff]   ;;  %v1042_v10 = vld [vmem:[%s1391_s1 + $0x24] ss:$16 sps:$4 sm:$0xff]   ;;  %v1046_v15 = vld [vmem:[%s1393_s3 + $0x8] sm:$0xff]  }
   0x3   :  { %907 = vmatpush3.bf16.msra.mxu1 %v1037_v1  ;;  %v1039_v3 = vld [vmem:[%s1391_s1 + $0x40] ss:$16 sps:$4 sm:$0xff]   ;;  %v1043_v12 = vld [vmem:[%s1391_s1 + $0x44] ss:$16 sps:$4 sm:$0xff]  }
   0x4   :  { %908 = vmatprep.subr.bf16.mxu1 %v1109_v0  ;;  %v1040_v4 = vld [vmem:[%s1391_s1 + $0x60] ss:$16 sps:$4 sm:$0xff]   ;;  %v1044_v13 = vld [vmem:[%s1391_s1 + $0x64] ss:$16 sps:$4 sm:$0xff]  }
   0x5   :  { %v22_v5 = vld [vmem:[%s1390_s0] sm:$0xff]  ;;  %v1053_v11 = vld [vmem:[%s1393_s3 + $0x50] sm:$0xff]  }
   0x6   :  { %v1049_v6 = vld [vmem:[%s1393_s3 + $0x40] sm:$0xff]   ;;  %v1169_v7 = vpack.c.bf16 %v22_v5, %v22_v5 }
   0x7   :  { %909 = vmatpush3.bf16.msra.mxu1 %v1038_v2  ;;  %931 = vmatpush3.bf16.msra.mxu0 %v1049_v6  ;;  %v1045_v14 = vld [vmem:[%s1393_s3] sm:$0xff]  }
   0x8   :  { %910 = vmatprep.subr.bf16.mxu1 %v1109_v0  ;;  %932 = vmatprep.subr.bf16.mxu0 %v1109_v0 }
   0xb   :  { %911 = vmatpush3.bf16.msra.mxu1 %v1039_v3  ;;  %933 = vmatpush3.bf16.msra.mxu0 %v1051_v9 }
   0xc   :  { %912 = vmatprep.subr.bf16.mxu1 %v1109_v0  ;;  %934 = vmatprep.subr.bf16.mxu0 %v1109_v0 }
   0xf   :  { %913 = vmatpush3.bf16.msra.mxu1 %v1040_v4  ;;  %935 = vmatpush3.bf16.msra.mxu0 %v1053_v11 }
  0x10   :  { %918 = vmatprep.subr.bf16.mxu1 %v1109_v0  ;;  %936 = vmatprep.subr.bf16.mxu0 %v1109_v0 }
  0x12   :  { %915 = vmatmul.mubr.msk.bf16.vlgmr.msra.gmra.mrb[0].mxu1 %vm63_vm1, %v1169_v7 }
  0x13   :  { %919 = vmatpush3.bf16.msra.mxu1 %v1041_v8  ;;  %926 = vmatprep.mubr.msk.bf16.mxu1 %vm1110_vm0, %v1109_v0 }
  0x14   :  { %920 = vmatprep.subr.bf16.mxu1 %v1109_v0 }
  0x17   :  { %921 = vmatpush3.bf16.msra.mxu1 %v1042_v10 }
  0x18   :  { %922 = vmatprep.subr.bf16.mxu1 %v1109_v0 }
  0x1b   :  { %923 = vmatpush3.bf16.msra.mxu1 %v1043_v12 }
  0x1c   :  { %924 = vmatprep.subr.bf16.mxu1 %v1109_v0 }
  0x1f   :  { %925 = vmatpush3.bf16.msra.mxu1 %v1044_v13 }
  0x20   :  { %950 = vmatprep.subr.bf16.mxu1 %v1109_v0 }
  0x22   :  { %927 = vmatmul.mubr.msk.bf16.vlgmr.msra.gmra.mrb[4].mxu1 %vm63_vm1, %v1169_v7 }
  0x23   :  { %951 = vmatpush3.bf16.msra.mxu1 %v1045_v14  ;;  %966 = vmatprep.mubr.msk.bf16.mxu1 %vm1110_vm0, %v1109_v0 }
  0x24   :  { %952 = vmatprep.subr.bf16.mxu1 %v1109_v0 }
  0x25   :  { %10 = vsyncpa [#allocation3], 0  ;;  %v1047_v16 = vld [vmem:[%s1393_s3 + $0x10] sm:$0xff]   ;;  %v1048_v17 = vld [vmem:[%s1393_s3 + $0x18] sm:$0xff]   ;;  %s1111_s19 = smov [#allocation2]  }
  0x26   :  { %v1050_v18 = vld [vmem:[%s1393_s3 + $0x20] sm:$0xff]   ;;  %v1052_v19 = vld [vmem:[%s1393_s3 + $0x28] sm:$0xff]   ;;  %v1054_v20 = vld [vmem:[%s1393_s3 + $0x30] sm:$0xff]  }
  0x27   :  { %953 = vmatpush3.bf16.msra.mxu1 %v1046_v15  ;;  %v1055_v21 = vld [vmem:[%s1393_s3 + $0x58] sm:$0xff]   ;;  %v1057_v23 = vld [vmem:[%s1393_s3 + $0x60] sm:$0xff]   ;;  %v1058_v24 = vld [vmem:[%s1393_s3 + $0x68] sm:$0xff]  }
  0x28   :  { %954 = vmatprep.subr.bf16.mxu1 %v1109_v0  ;;  %v1056_v22 = vld [vmem:[%s1393_s3 + $0x38] sm:$0xff]   ;;  %937 = vmatpush3.bf16.msra.mxu0 %v1055_v21  ;;  %v1059_v25 = vld [vmem:[%s1393_s3 + $0x70] sm:$0xff]   ;;  %v793_v27 = vld [vmem:[%s1392_s2] ss:$0 sm:$0xff] }
  0x29   :  { %938 = vmatprep.subr.bf16.mxu0 %v1109_v0  ;;  %v1060_v26 = vld [vmem:[%s1393_s3 + $0x78] sm:$0xff]   ;;  %v799_v35 = vld [vmem:[%s1392_s2 + $0x1] ss:$0 sm:$0xff]  ;;  %v1070_v52 = vld [vmem:[%s1393_s3 + $0x88] sm:$0xff]  }
  0x2a   :  { %v1061_v42 = vld [vmem:[%s1391_s1 + $0x8] ss:$16 sps:$4 sm:$0xff]   ;;  %v1065_v47 = vld [vmem:[%s1391_s1 + $0xc] ss:$16 sps:$4 sm:$0xff]   ;;  %v1069_v51 = vld [vmem:[%s1393_s3 + $0x80] sm:$0xff]  }
  0x2b   :  { %955 = vmatpush3.bf16.msra.mxu1 %v1047_v16  ;;  %v1062_v44 = vld [vmem:[%s1391_s1 + $0x28] ss:$16 sps:$4 sm:$0xff]   ;;  %v1066_v48 = vld [vmem:[%s1391_s1 + $0x2c] ss:$16 sps:$4 sm:$0xff]   ;;  %v1071_v53 = vld [vmem:[%s1393_s3 + $0x90] sm:$0xff]  }
  0x2c   :  { %956 = vmatprep.subr.bf16.mxu1 %v1109_v0  ;;  %939 = vmatpush3.bf16.msra.mxu0 %v1057_v23  ;;  %v1063_v45 = vld [vmem:[%s1391_s1 + $0x48] ss:$16 sps:$4 sm:$0xff]   ;;  %v1067_v49 = vld [vmem:[%s1391_s1 + $0x4c] ss:$16 sps:$4 sm:$0xff]   ;;  %v1074_v55 = vld [vmem:[%s1393_s3 + $0xc0] sm:$0xff]  }
  0x2d   :  { %940 = vmatprep.subr.bf16.mxu0 %v1109_v0  ;;  %v1064_v46 = vld [vmem:[%s1391_s1 + $0x68] ss:$16 sps:$4 sm:$0xff]   ;;  %v1068_v50 = vld [vmem:[%s1391_s1 + $0x6c] ss:$16 sps:$4 sm:$0xff]   ;;  %v1073_v56 = vld [vmem:[%s1393_s3 + $0xa0] sm:$0xff]  }
  0x2e   :  { %v1072_v54 = vld [vmem:[%s1393_s3 + $0x98] sm:$0xff]   ;;  %v1076_v57 = vld [vmem:[%s1393_s3 + $0xc8] sm:$0xff]   ;;  %v1077_v59 = vld [vmem:[%s1393_s3 + $0xb0] sm:$0xff]  }
  0x2f   :  { %957 = vmatpush3.bf16.msra.mxu1 %v1048_v17  ;;  %v1075_v58 = vld [vmem:[%s1393_s3 + $0xa8] sm:$0xff]   ;;  %v1078_v60 = vld [vmem:[%s1393_s3 + $0xd0] sm:$0xff]   ;;  %v1079_v61 = vld [vmem:[%s1393_s3 + $0xb8] sm:$0xff]  }
  0x30   :  { %958 = vmatprep.subr.bf16.mxu1 %v1109_v0  ;;  %941 = vmatpush3.bf16.msra.mxu0 %v1058_v24  ;;  %v1080_v62 = vld [vmem:[%s1393_s3 + $0xd8] sm:$0xff]   ;;  %v1081_v63 = vld [vmem:[%s1393_s3 + $0xe0] sm:$0xff]   ;;  %v1082_v1 = vld [vmem:[%s1393_s3 + $0xe8] sm:$0xff]  }
  0x31   :  { %942 = vmatprep.subr.bf16.mxu0 %v1109_v0  ;;  %v1083_v2 = vld [vmem:[%s1393_s3 + $0xf0] sm:$0xff]   ;;  %v1084_v3 = vld [vmem:[%s1393_s3 + $0xf8] sm:$0xff]   ;;  %v821_v13 = vld [vmem:[%s1392_s2 + $0x2] ss:$0 sm:$0xff] }
  0x33   :  { %959 = vmatpush3.bf16.msra.mxu1 %v1050_v18 }
  0x34   :  { %960 = vmatprep.subr.bf16.mxu1 %v1109_v0  ;;  %943 = vmatpush3.bf16.msra.mxu0 %v1059_v25 }
  0x35   :  { %944 = vmatprep.subr.bf16.mxu0 %v1109_v0 }
  0x37   :  { %961 = vmatpush3.bf16.msra.mxu1 %v1052_v19 }
  0x38   :  { %962 = vmatprep.subr.bf16.mxu1 %v1109_v0  ;;  %945 = vmatpush3.bf16.msra.mxu0 %v1060_v26 }
  0x39   :  { %970 = vmatprep.subr.bf16.mxu0 %v1109_v0 }
  0x3b   :  { %963 = vmatpush3.bf16.msra.mxu1 %v1054_v20  ;;  %v835_v20 = vld [vmem:[%s1392_s2 + $0x3] ss:$0 sm:$0xff]  ;;  %s785_s2 = sshll.u32 %s1111_s19, 4  ;;  %s786_s2 = int_to_ptr.vmem [resolvable:$true] %s785_s2 }
  0x3c   :  { %964 = vmatprep.subr.bf16.mxu1 %v1109_v0  ;;  %s1085_s20 = scalar_lea.vmem %s786_s2, 128  ;;  %p1090_p1 = scmp.lt.s32.totalorder %s786_s2, %s786_s2 }
  0x3d   :  { %p1086_p0 = scmp.ne.s32.totalorder %s786_s2, %s1085_s20  ;;  %p1091_p2 = scmp.lt.s32.totalorder %s1085_s20, %s1085_s20 }
  0x3f   :  { %965 = vmatpush3.bf16.msra.mxu1 %v1056_v22  ;;  %p1092_p3 = por %p1091_p2, %p1090_p1 }
  0x40   :  { %982 = vmatprep.subr.bf16.mxu1 %v1109_v0 }
  0x41   :  { %p1093_p4 = pnand %p1092_p3, %p1086_p0 }
  0xe5   :  { %v101_v28 = vpop.f32.mrb[0].mxu1 }
  0xe6   :  { %v102_v29 = vadd.f32 %v793_v27, %v101_v28  ;;  %v916_v30 = vpop.f32.mrb[1].mxu1 }
  0xe7   :  { %v104_v31 = vpop.f32.mrb[2].mxu1 }
  0xe8   :  { %v107_v32 = vmax.f32 %v102_v29, 0.0  ;;  %v917_v33 = vpop.f32.mrb[3].mxu1 }
  0xea   :  { %v108_v34 = vpack.c.bf16 %v107_v32, %v107_v32 }
  0xec   :  { %967 = vmatmul.mubr.bf16.vlgmr.msra.gmra.mrb[8].mxu1 %v108_v34  ;;  %v849_v34 = vld [vmem:[%s1394_s4] ss:$0 sm:$0xff] }
  0xed   :  { %998 = vmatprep.mubr.msk.bf16.mxu1 %vm1110_vm0, %v1109_v0  ;;  %983 = vmatpush3.bf16.msra.mxu1 %v1069_v51 }
  0xee   :  { %984 = vmatprep.subr.bf16.mxu1 %v1109_v0 }
  0xf1   :  { %985 = vmatpush3.bf16.msra.mxu1 %v1070_v52 }
  0xf2   :  { %986 = vmatprep.subr.bf16.mxu1 %v1109_v0 }
  0xf5   :  { %v198_v36 = vpop.f32.mrb[4].mxu1  ;;  %987 = vmatpush3.bf16.msra.mxu1 %v1071_v53 }
  0xf6   :  { %v199_v37 = vadd.f32 %v799_v35, %v198_v36  ;;  %v928_v38 = vpop.f32.mrb[5].mxu1  ;;  %988 = vmatprep.subr.bf16.mxu1 %v1109_v0 }
  0xf7   :  { %v201_v39 = vpop.f32.mrb[6].mxu1 }
  0xf8   :  { %v204_v40 = vmax.f32 %v199_v37, 0.0  ;;  %v929_v41 = vpop.f32.mrb[7].mxu1 }
  0xf9   :  { %989 = vmatpush3.bf16.msra.mxu1 %v1072_v54 }
  0xfa   :  { %v205_v43 = vpack.c.bf16 %v204_v40, %v204_v40  ;;  %990 = vmatprep.subr.bf16.mxu1 %v1109_v0 }
  0xfc   :  { %947 = vmatmul.mubr.bf16.vlgmr.msra.gmra.mrb[0].mxu0 %v205_v43 }
  0xfd   :  { %971 = vmatpush3.bf16.msra.mxu0 %v1061_v42  ;;  %978 = vmatprep.mubr.msk.bf16.mxu0 %vm1110_vm0, %v1109_v0 }
  0xfe   :  { %972 = vmatprep.subr.bf16.mxu0 %v1109_v0  ;;  %991 = vmatpush3.bf16.msra.mxu1 %v1073_v56 }
  0xff   :  { %992 = vmatprep.subr.bf16.mxu1 %v1109_v0 }
 0x101   :  { %973 = vmatpush3.bf16.msra.mxu0 %v1062_v44 }
 0x102   :  { %974 = vmatprep.subr.bf16.mxu0 %v1109_v0  ;;  %993 = vmatpush3.bf16.msra.mxu1 %v1075_v58 }
 0x103   :  { %994 = vmatprep.subr.bf16.mxu1 %v1109_v0 }
 0x105   :  { %975 = vmatpush3.bf16.msra.mxu0 %v1063_v45 }
 0x106   :  { %976 = vmatprep.subr.bf16.mxu0 %v1109_v0  ;;  %995 = vmatpush3.bf16.msra.mxu1 %v1077_v59 }
 0x107   :  { %996 = vmatprep.subr.bf16.mxu1 %v1109_v0 }
 0x109   :  { %977 = vmatpush3.bf16.msra.mxu0 %v1064_v46 }
 0x10a   :  { %1002 = vmatprep.subr.bf16.mxu0 %v1109_v0  ;;  %997 = vmatpush3.bf16.msra.mxu1 %v1079_v61 }
 0x10c   :  { %979 = vmatmul.mubr.msk.bf16.vlgmr.msra.gmra.mrb[4].mxu0 %vm63_vm1, %v1169_v7 }
 0x10d   :  { %1003 = vmatpush3.bf16.msra.mxu0 %v1065_v47  ;;  %1010 = vmatprep.mubr.msk.bf16.mxu0 %vm1110_vm0, %v1109_v0 }
 0x10e   :  { %1004 = vmatprep.subr.bf16.mxu0 %v1109_v0 }
 0x111   :  { %1005 = vmatpush3.bf16.msra.mxu0 %v1066_v48 }
 0x112   :  { %1006 = vmatprep.subr.bf16.mxu0 %v1109_v0 }
 0x115   :  { %1007 = vmatpush3.bf16.msra.mxu0 %v1067_v49 }
 0x116   :  { %1008 = vmatprep.subr.bf16.mxu0 %v1109_v0 }
 0x119   :  { %1009 = vmatpush3.bf16.msra.mxu0 %v1068_v50 }
 0x11a   :  { %1014 = vmatprep.subr.bf16.mxu0 %v1109_v0 }
 0x11c   :  { %1011 = vmatmul.mubr.msk.bf16.vlgmr.msra.gmra.mrb[8].mxu0 %vm63_vm1, %v1169_v7 }
 0x11d   :  { %1030 = vmatprep.mubr.msk.bf16.mxu0 %vm1110_vm0, %v1109_v0  ;;  %1015 = vmatpush3.bf16.msra.mxu0 %v1074_v55 }
 0x11e   :  { %1016 = vmatprep.subr.bf16.mxu0 %v1109_v0 }
 0x121   :  { %1017 = vmatpush3.bf16.msra.mxu0 %v1076_v57 }
 0x122   :  { %1018 = vmatprep.subr.bf16.mxu0 %v1109_v0 }
 0x125   :  { %1019 = vmatpush3.bf16.msra.mxu0 %v1078_v60 }
 0x126   :  { %1020 = vmatprep.subr.bf16.mxu0 %v1109_v0 }
 0x129   :  { %1021 = vmatpush3.bf16.msra.mxu0 %v1080_v62 }
 0x12a   :  { %1022 = vmatprep.subr.bf16.mxu0 %v1109_v0 }
 0x12d   :  { %1023 = vmatpush3.bf16.msra.mxu0 %v1081_v63 }
 0x12e   :  { %1024 = vmatprep.subr.bf16.mxu0 %v1109_v0 }
 0x131   :  { %1025 = vmatpush3.bf16.msra.mxu0 %v1082_v1 }
 0x132   :  { %1026 = vmatprep.subr.bf16.mxu0 %v1109_v0 }
 0x135   :  { %1027 = vmatpush3.bf16.msra.mxu0 %v1083_v2 }
 0x136   :  { %1028 = vmatprep.subr.bf16.mxu0 %v1109_v0 }
 0x139   :  { %1029 = vmatpush3.bf16.msra.mxu0 %v1084_v3 }
 0x1bf   :  { %v392_v4 = vpop.f32.mrb[8].mxu1 }
 0x1c0   :  { %v968_v5 = vpop.f32.mrb[9].mxu1 }
 0x1c1   :  { %v395_v6 = vpop.f32.mrb[10].mxu1 }
 0x1c2   :  { %v969_v7 = vpop.f32.mrb[11].mxu1 }
 0x1cf   :  { %v304_v8 = vpop.f32.mrb[0].mxu0 }
 0x1d0   :  { %v393_v9 = vadd.f32 %v392_v4, %v304_v8  ;;  %v948_v10 = vpop.f32.mrb[1].mxu0 }
 0x1d1   :  { %v307_v11 = vpop.f32.mrb[2].mxu0 }
 0x1d2   :  { %v949_v12 = vpop.f32.mrb[3].mxu0 }
 0x1df   :  { %v471_v14 = vpop.f32.mrb[4].mxu0 }
 0x1e0   :  { %v472_v0 = vadd.f32 %v821_v13, %v471_v14  ;;  %v980_v15 = vpop.f32.mrb[5].mxu0 }
 0x1e1   :  { %v474_v16 = vpop.f32.mrb[6].mxu0 }
 0x1e2   :  { %v477_v17 = vmax.f32 %v472_v0, 0.0  ;;  %v981_v18 = vpop.f32.mrb[7].mxu0 }
 0x1e4   :  { %v478_v19 = vpack.c.bf16 %v477_v17, %v477_v17 }
 0x1e6   :  { %999 = vmatmul.mubr.bf16.vlgmr.msra.gmra.mrb[12].mxu1 %v478_v19 }
 0x1ef   :  { %v657_v21 = vpop.f32.mrb[8].mxu0 }
 0x1f0   :  { %v658_v22 = vadd.f32 %v835_v20, %v657_v21  ;;  %v1012_v23 = vpop.f32.mrb[9].mxu0 }
 0x1f1   :  { %v660_v24 = vpop.f32.mrb[10].mxu0 }
 0x1f2   :  { %v663_v25 = vmax.f32 %v658_v22, 0.0  ;;  %v1013_v26 = vpop.f32.mrb[11].mxu0 }
 0x1f4   :  { %v664_v27 = vpack.c.bf16 %v663_v25, %v663_v25 }
 0x1f6   :  { %1031 = vmatmul.mubr.bf16.vlgmr.msra.gmra.mrb[12].mxu0 %v664_v27 }
 0x2b9   :  { %v577_v28 = vpop.f32.mrb[12].mxu1 }
 0x2ba   :  { %v583_v29 = vadd.f32 %v577_v28, %v393_v9  ;;  %v1000_v30 = vpop.f32.mrb[13].mxu1 }
 0x2bb   :  { %v580_v31 = vpop.f32.mrb[14].mxu1 }
 0x2bc   :  { %v1001_v32 = vpop.f32.mrb[15].mxu1 }
 0x2c9   :  { %v763_v33 = vpop.f32.mrb[12].mxu0 }
 0x2ca   :  { %v769_v35 = vadd.f32 %v763_v33, %v583_v29  ;;  %v1032_v36 = vpop.f32.mrb[13].mxu0 }
 0x2cb   :  { %v766_v37 = vpop.f32.mrb[14].mxu0 }
 0x2cc   :  { %v1033_v38 = vpop.f32.mrb[15].mxu0  ;;  %v777_v39 = vadd.f32 %v849_v34, %v769_v35 }
 0x2ce   :  { %778 = vst [vmem:[#allocation2] sm:$0xff] %v777_v39 }
 0x2cf   :  { %1096 = shalt.err (!%p1093_p4)
}
 0x2d0   :  { %s1097_s4 = scalar_lea.hbm %s1395_s5, 128 }
 0x2d1   :  { %p1098_p5 = scmp.ne.s32.totalorder %s1395_s5, %s1097_s4  ;;  %p1101_p6 = scmp.lt.u32.totalorder %s1097_s4, %s1395_s5 }
 0x2d3   :  { %p1103_p7 = pnand %p1101_p6, %p1098_p5 }
 0x2d5   :  { %1106 = shalt.err (!%p1103_p7)
}
 0x2d6   :  { %788 = dma.vmem_to_hbm [thread:$0]  %s786_s2, 128, %s1395_s5, [#allocation3]  }
 0x2d7   :  { %1107 = dma.done.wait [#allocation3], 128  }
 0x2d8   :  { %1108 = vsyncadd [#allocation3], 4294967168 }
 0x2d9   :  { %792 = vsyncpa [#allocation3], 1 }

</bundles_post_ra>
